<compile_context>
chip_gen: v5e
topology: v5e:2x2
jax: 0.10.0
libtpu: 0.0.40
codegen_flags: <defaults>
</compile_context>

<pallas_src>
import jax
import jax.numpy as jnp
import numpy as np
from jax.experimental import pallas as pl
from jax.experimental.pallas import tpu as pltpu


def _round_up(x: int, m: int) -> int:
    return ((x + m - 1) // m) * m


# ----------------------------------------------------------------------------
# Kernel 1: align_net per SOURCE NODE TYPE (deduplicated across relations).
#   x_al = [x_src, 1, 0...] @ [[W_al], [b_al], [0...]]  (bias folded exactly)
# ----------------------------------------------------------------------------
def _align_kernel(x_ref, w_ref, o_ref):
    o_ref[...] = jnp.dot(x_ref[...], w_ref[...],
                         preferred_element_type=jnp.float32).astype(o_ref.dtype)


def _align_call(x_src_aug, w_al_aug, src_tile):
    S, n_src_p, d_src1_p = x_src_aug.shape
    d_al_p = w_al_aug.shape[-1]
    blk = 2 * 2 * (src_tile * d_src1_p + d_src1_p * d_al_p + src_tile * d_al_p)
    vmem_limit = int(min(100 << 20, max(32 << 20, 2 * blk)))
    return pl.pallas_call(
        _align_kernel,
        out_shape=jax.ShapeDtypeStruct((S, n_src_p, d_al_p), jnp.bfloat16),
        grid_spec=pltpu.PrefetchScalarGridSpec(
            num_scalar_prefetch=0,
            grid=(S, n_src_p // src_tile),
            in_specs=[
                pl.BlockSpec((None, src_tile, d_src1_p), lambda s, i: (s, i, 0)),
                pl.BlockSpec((None, d_src1_p, d_al_p), lambda s, i: (s, 0, 0)),
            ],
            out_specs=pl.BlockSpec((None, src_tile, d_al_p),
                                   lambda s, i: (s, i, 0)),
        ),
        compiler_params=pltpu.CompilerParams(
            dimension_semantics=("parallel", "parallel"),
            vmem_limit_bytes=vmem_limit),
    )(x_src_aug, w_al_aug)


# ----------------------------------------------------------------------------
# Kernel 2: fused GIN aggregation + subnet + HeteroConv 'sum'.
# Grid = (dst_tile index, valid (target,relation) pair, src_tile index).
# Refs after BlockSpec squeezing:
#   tbl   : [3, P] SMEM   row0=src-type idx, row1=target idx, row2=first-flag
#   x_al  : [src_tile, D_al_p]      bf16, per source type
#   adj   : [dst_tile, src_tile]    int8 edge counts A[dst, src]
#   x_dst : [dst_tile, D_dst1_p]    bf16, target features + ones column
#   w1d   : [D_dst1_p, H_p]         bf16, (1+eps) folded, b1 as the ones-row
#   w1m   : [D_al_p,  H_p]          bf16
#   w2    : [H_p, D_out_p]          bf16
#   b2    : [1, D_out_p]            f32
#   out   : [dst_tile, D_out_p]     f32, resident across pairs of one target
#   mv    : [dst_tile, D_al_p]      f32 VMEM scratch (A @ x_al accumulator)
# ----------------------------------------------------------------------------
def hexgin_main_kernel(tbl_ref, x_al_ref, adj_ref, x_dst_ref,
                       w1d_ref, w1m_ref, w2_ref, b2_ref, out_ref, mv_ref):
    p = pl.program_id(1)
    k = pl.program_id(2)
    nk = pl.num_programs(2)
    first = tbl_ref[2, p]

    @pl.when(jnp.logical_and(first == 1, k == 0))
    def _():
        out_ref[...] = jnp.zeros_like(out_ref)

    @pl.when(k == 0)
    def _():
        mv_ref[...] = jnp.zeros_like(mv_ref)

    # GIN 'sum' aggregation as an MXU matmul over a (dst_tile, src_tile) slab
    # of the int8 edge-count matrix, widened in-kernel (exact for counts<=127).
    adj = adj_ref[...].astype(jnp.float32).astype(jnp.bfloat16)
    mv_ref[...] += jnp.dot(adj, x_al_ref[...],
                           preferred_element_type=jnp.float32)

    @pl.when(k == nk - 1)
    def _():
        # concat([(1+eps)*x_dst, mv]) @ W1 + b1, with W1 split into its two row
        # blocks; (1+eps) and b1 are folded into w1d (ones column on x_dst).
        h = (jnp.dot(x_dst_ref[...], w1d_ref[...],
                     preferred_element_type=jnp.float32)
             + jnp.dot(mv_ref[...].astype(jnp.bfloat16), w1m_ref[...],
                       preferred_element_type=jnp.float32))
        h = jnp.maximum(h, 0.0)                                   # ReLU
        # Second Linear of the subnet, accumulated (HeteroConv aggr='sum').
        out_ref[...] += (jnp.dot(h.astype(jnp.bfloat16), w2_ref[...],
                                 preferred_element_type=jnp.float32)
                         + b2_ref[...])


def _hexgin_main_call(tbl, x_al, adj, x_dst, w1d, w1m, w2, b2,
                      n_targets, dst_tile, src_tile):
    P, n_dst_p, n_src_p = adj.shape
    d_al_p = x_al.shape[-1]
    d_dst1_p = x_dst.shape[-1]
    h_p = w1d.shape[-1]
    d_out_p = w2.shape[-1]
    nd = n_dst_p // dst_tile
    nk = n_src_p // src_tile
    T = n_targets

    # Per-step VMEM blocks (double-buffered by the BlockSpec pipeline).
    blk_bytes = (src_tile * d_al_p * 2 + dst_tile * src_tile * 1
                 + dst_tile * d_dst1_p * 2
                 + (d_dst1_p + d_al_p) * h_p * 2 + h_p * d_out_p * 2
                 + d_out_p * 4 + dst_tile * d_out_p * 4)
    vmem_needed = 2 * blk_bytes + dst_tile * d_al_p * 4 + (2 << 20)
    vmem_limit = int(min(100 << 20, max(32 << 20, 2 * vmem_needed)))

    flops = 2 * P * n_dst_p * (n_src_p * d_al_p
                               + (d_dst1_p + d_al_p) * h_p
                               + h_p * d_out_p)
    bytes_accessed = (adj.size                                    # int8
                      + nd * P * (n_src_p * d_al_p * 2
                                  + (d_dst1_p + d_al_p) * h_p * 2
                                  + h_p * d_out_p * 2 + d_out_p * 4
                                  + dst_tile * d_dst1_p * 2)
                      + T * n_dst_p * d_out_p * 4)

    return pl.pallas_call(
        hexgin_main_kernel,
        out_shape=jax.ShapeDtypeStruct((T, n_dst_p, d_out_p), jnp.float32),
        grid_spec=pltpu.PrefetchScalarGridSpec(
            num_scalar_prefetch=1,                 # tbl: [3, P] int32 in SMEM
            grid=(nd, P, nk),                      # (dst tile, pair, src tile)
            in_specs=[
                pl.BlockSpec((None, src_tile, d_al_p),          # x_al / src type
                             lambda d, p, k, tbl: (tbl[0, p], k, 0)),
                pl.BlockSpec((None, dst_tile, src_tile),        # int8 edge counts
                             lambda d, p, k, tbl: (p, d, k)),
                pl.BlockSpec((None, dst_tile, d_dst1_p),        # x_dst (+ones col)
                             lambda d, p, k, tbl: (tbl[1, p], d, 0)),
                pl.BlockSpec((None, d_dst1_p, h_p),             # W1 dst half (+b1)
                             lambda d, p, k, tbl: (p, 0, 0)),
                pl.BlockSpec((None, d_al_p, h_p),               # W1 message half
                             lambda d, p, k, tbl: (p, 0, 0)),
                pl.BlockSpec((None, h_p, d_out_p),              # W2
                             lambda d, p, k, tbl: (p, 0, 0)),
                pl.BlockSpec((None, 1, d_out_p),                # b2
                             lambda d, p, k, tbl: (p, 0, 0)),
            ],
            out_specs=pl.BlockSpec((None, dst_tile, d_out_p),
                                   lambda d, p, k, tbl: (tbl[1, p], d, 0)),
            scratch_shapes=[pltpu.VMEM((dst_tile, d_al_p), jnp.float32)],
        ),
        compiler_params=pltpu.CompilerParams(
            dimension_semantics=("parallel", "arbitrary", "arbitrary"),
            vmem_limit_bytes=vmem_limit),
        cost_estimate=pl.CostEstimate(flops=int(flops), transcendentals=0,
                                      bytes_accessed=int(bytes_accessed)),
    )(tbl, x_al, adj, x_dst, w1d, w1m, w2, b2)


# ----------------------------------------------------------------------------
# HexGINLayer wrapper: host-side (numpy) packing + two pallas_calls.
# ----------------------------------------------------------------------------
def hexgin_layer(x_dict, edge_index_dict, align_params, rel_params,
                 *, dst_tile_max=512, src_tile_max=2048):
    rel_keys = list(edge_index_dict.keys())
    src_types, targets = [], []
    for (s, _, t) in rel_keys:
        if s not in src_types:
            src_types.append(s)
        if t not in targets:
            targets.append(t)
    # Valid relation pairs grouped by target; "first pair of its target" flag
    # drives the fused HeteroConv-sum accumulator init.
    pairs, first_flags = [], []
    for t in targets:
        first = 1
        for rk in rel_keys:
            if rk[2] == t:
                pairs.append(rk)
                first_flags.append(first)
                first = 0
    P, S, T = len(pairs), len(src_types), len(targets)

    n_src_max = max(x_dict[s].shape[0] for s in src_types)
    n_dst_max = max(x_dict[t].shape[0] for t in targets)
    d_src_max = max(x_dict[s].shape[1] for s in src_types)
    d_dst_max = max(x_dict[t].shape[1] for t in targets)
    d_al_max = max(align_params[s]["w"].shape[1] for s in src_types)
    h_max = max(rel_params[rk]["w1_dst"].shape[1] for rk in rel_keys)
    d_out_max = max(rel_params[rk]["w2"].shape[1] for rk in rel_keys)

    # Layout-friendly padding: lane dims to 128, dst rows to 32 (int8 tile).
    n_src_p = _round_up(n_src_max, 128)
    src_tile = min(n_src_p, src_tile_max)
    n_src_p = _round_up(n_src_p, src_tile)
    n_dst_p = _round_up(n_dst_max, 32)
    dst_tile = min(n_dst_p, dst_tile_max)
    n_dst_p = _round_up(n_dst_p, dst_tile)
    d_src1_p = _round_up(d_src_max + 1, 128)      # +1 ones col (align bias fold)
    d_dst1_p = _round_up(d_dst_max + 1, 128)      # +1 ones col (b1 fold)
    d_al_p = _round_up(d_al_max, 128)
    h_p = _round_up(h_max, 128)
    d_out_p = _round_up(d_out_max, 128)

    bf16 = jnp.bfloat16

    # --- node features (device side): pad, append ones column, stack once ---
    def feat_aug(x, n_rows, n_cols):
        n, d = x.shape
        x1 = jnp.concatenate([x, jnp.ones((n, 1), x.dtype)], axis=1)
        return jnp.pad(x1, ((0, n_rows - n), (0, n_cols - d - 1)))

    x_src_aug = jnp.stack([feat_aug(x_dict[s], n_src_p, d_src1_p)
                           for s in src_types]).astype(bf16)
    x_dst_aug = jnp.stack([feat_aug(x_dict[t], n_dst_p, d_dst1_p)
                           for t in targets]).astype(bf16)

    # --- weights / adjacency / tables: prebuilt in numpy, one device_put each ---
    w_al_np = np.zeros((S, d_src1_p, d_al_p), np.float32)
    for si, s in enumerate(src_types):
        d_s = x_dict[s].shape[1]
        d_a = align_params[s]["w"].shape[1]
        w_al_np[si, :d_s, :d_a] = np.asarray(align_params[s]["w"])
        w_al_np[si, d_s, :d_a] = np.asarray(align_params[s]["b"]).reshape(-1)

    w1d_np = np.zeros((P, d_dst1_p, h_p), np.float32)
    w1m_np = np.zeros((P, d_al_p, h_p), np.float32)
    w2_np = np.zeros((P, h_p, d_out_p), np.float32)
    b2_np = np.zeros((P, 1, d_out_p), np.float32)
    adj_np = np.zeros((P, n_dst_p, n_src_p), np.int32)
    tbl_np = np.zeros((3, P), np.int32)

    for pi, rk in enumerate(pairs):
        s, _, t = rk
        rp = rel_params[rk]
        d_dst = x_dict[t].shape[1]
        d_a = rp["w1_mv"].shape[0]
        h = rp["w1_dst"].shape[1]
        d_o = rp["w2"].shape[1]
        eps = float(np.asarray(rp["eps"]).reshape(()))
        w1d_np[pi, :d_dst, :h] = (1.0 + eps) * np.asarray(rp["w1_dst"])
        w1d_np[pi, d_dst, :h] = np.asarray(rp["b1"]).reshape(-1)   # b1 (no eps)
        w1m_np[pi, :d_a, :h] = np.asarray(rp["w1_mv"])
        w2_np[pi, :h, :d_o] = np.asarray(rp["w2"])
        b2_np[pi, 0, :d_o] = np.asarray(rp["b2"]).reshape(-1)
        ei = np.asarray(edge_index_dict[rk])
        np.add.at(adj_np[pi], (ei[1], ei[0]), 1)    # A[dst, src] edge counts
        tbl_np[0, pi] = src_types.index(s)
        tbl_np[1, pi] = targets.index(t)
        tbl_np[2, pi] = first_flags[pi]

    assert adj_np.max() <= 127, "int8 adjacency requires edge multiplicity <= 127"

    w_al = jnp.asarray(w_al_np, dtype=bf16)
    w1d = jnp.asarray(w1d_np, dtype=bf16)
    w1m = jnp.asarray(w1m_np, dtype=bf16)
    w2 = jnp.asarray(w2_np, dtype=bf16)
    b2 = jnp.asarray(b2_np)
    adj = jnp.asarray(adj_np.astype(np.int8))
    tbl = jnp.asarray(tbl_np)

    # Kernel 1: per-source-type align net (bias folded via ones column).
    x_al = _align_call(x_src_aug, w_al, src_tile)
    # Kernel 2: fused aggregation + subnet + HeteroConv 'sum'.
    out = _hexgin_main_call(tbl, x_al, adj, x_dst_aug,
                            w1d, w1m, w2, b2, T, dst_tile, src_tile)

    out_dict = {}
    for ti, t in enumerate(targets):
        rk0 = next(rk for rk in pairs if rk[2] == t)
        n_d = x_dict[t].shape[0]
        d_o = rel_params[rk0]["w2"].shape[1]
        out_dict[t] = out[ti, :n_d, :d_o]
    return out_dict


# ----------------------------------------------------------------------------
# Pure-JAX reference (module semantics).  If matmul_dtype is set, matmul
# operands are cast to it (mirrors the kernel's bf16 mixed precision).
# ----------------------------------------------------------------------------
def hexgin_layer_ref(x_dict, edge_index_dict, align_params, rel_params,
                     matmul_dtype=None):
    def c(a):
        return a.astype(matmul_dtype) if matmul_dtype is not None else a

    out_dict = {}
    for (src, rel, trgt), ei in edge_index_dict.items():
        x_src, x_dst = x_dict[src], x_dict[trgt]
        ap, rp = align_params[src], rel_params[(src, rel, trgt)]
        x_al = jnp.dot(c(x_src), c(ap["w"]),
                       preferred_element_type=jnp.float32) + ap["b"]
        mv = jnp.zeros((x_dst.shape[0], x_al.shape[1]), jnp.float32
                       ).at[ei[1]].add(x_al[ei[0]])
        x_eps = (1.0 + rp["eps"].reshape(())) * x_dst
        h = (jnp.dot(c(x_eps), c(rp["w1_dst"]),
                     preferred_element_type=jnp.float32)
             + jnp.dot(c(mv), c(rp["w1_mv"]),
                       preferred_element_type=jnp.float32)
             + rp["b1"])
        h = jnp.maximum(h, 0.0)
        out = jnp.dot(c(h), c(rp["w2"]),
                      preferred_element_type=jnp.float32) + rp["b2"]
        out_dict[trgt] = out + out_dict.get(trgt, 0.0)
    return out_dict


if __name__ == "__main__":
    key = jax.random.PRNGKey(0)

    # Small heterogeneous graph: two node types, three relations.
    N_USER, D_USER = 8, 16
    N_ITEM, D_ITEM = 8, 24
    D_ALIGN, HIDDEN, D_OUT = 32, 32, 16
    N_EDGES = 12

    node_dims = {"user": D_USER, "item": D_ITEM}
    relations = [("user", "buys", "item"),
                 ("item", "bought_by", "user"),
                 ("user", "follows", "user")]

    keys = iter(jax.random.split(key, 64))

    x_dict = {
        "user": jax.random.normal(next(keys), (N_USER, D_USER), jnp.float32),
        "item": jax.random.normal(next(keys), (N_ITEM, D_ITEM), jnp.float32),
    }
    n_nodes = {"user": N_USER, "item": N_ITEM}

    # Edge indices per relation: row 0 = source ids, row 1 = target ids.
    edge_index_dict = {}
    for (s, r, t) in relations:
        src_ids = jax.random.randint(next(keys), (N_EDGES,), 0, n_nodes[s])
        dst_ids = jax.random.randint(next(keys), (N_EDGES,), 0, n_nodes[t])
        edge_index_dict[(s, r, t)] = jnp.stack([src_ids, dst_ids])

    def linear_params(k, d_in, d_out):
        k1, k2 = jax.random.split(k)
        w = jax.random.normal(k1, (d_in, d_out), jnp.float32) * (1.0 / d_in ** 0.5)
        b = jax.random.normal(k2, (1, d_out), jnp.float32) * 0.01
        return w, b

    # One align_net (Linear D_src -> D_ALIGN) per source node type.
    align_params = {}
    for nt, d in node_dims.items():
        w, b = linear_params(next(keys), d, D_ALIGN)
        align_params[nt] = {"w": w, "b": b}

    # One HexGINConv subnet (Linear -> ReLU -> Linear) + eps per relation.
    rel_params = {}
    for i, (s, r, t) in enumerate(relations):
        d_dst = node_dims[t]
        w1, b1 = linear_params(next(keys), d_dst + D_ALIGN, HIDDEN)
        w2, b2 = linear_params(next(keys), HIDDEN, D_OUT)
        rel_params[(s, r, t)] = {
            "eps": jnp.full((1, 1), 0.05 * (i + 1), jnp.float32),
            "w1_dst": w1[:d_dst],       # rows multiplying (1+eps)*x_dst
            "w1_mv": w1[d_dst:],        # rows multiplying aggregated messages
            "b1": b1,
            "w2": w2,
            "b2": b2,
        }

    out = hexgin_layer(x_dict, edge_index_dict, align_params, rel_params)
    out = {k: jax.block_until_ready(v) for k, v in out.items()}

    ref32 = hexgin_layer_ref(x_dict, edge_index_dict, align_params, rel_params)
    refbf = hexgin_layer_ref(x_dict, edge_index_dict, align_params, rel_params,
                             matmul_dtype=jnp.bfloat16)
    for k in out:
        assert out[k].shape == (n_nodes[k], D_OUT), (k, out[k].shape)
        # Check against a reference mirroring the kernel's bf16 mixed precision
        # (validates padding / stacking / fused accumulation / bias folds).
        assert jnp.allclose(out[k], refbf[k], atol=5e-2, rtol=5e-2), k
        # Sanity check against the full-f32 module semantics (bf16 drift).
        rel_err = float(jnp.linalg.norm(out[k] - ref32[k])
                        / (jnp.linalg.norm(ref32[k]) + 1e-8))
        assert rel_err < 0.05, (k, rel_err)

    print("KERNEL_OK")
</pallas_src>

<mosaic_0001>
module attributes {stable_mosaic.version = 11 : i64} {
  func.func @_align_kernel(%arg0: i32, %arg1: i32, %arg2: memref<1x128x128xbf16, #tpu.memory_space<vmem>>, %arg3: memref<1x128x128xbf16, #tpu.memory_space<vmem>>, %arg4: memref<1x128x128xbf16, #tpu.memory_space<vmem>>) attributes {dimension_semantics = [#tpu.dimension_semantics<parallel>, #tpu.dimension_semantics<parallel>], iteration_bounds = array<i64: 2, 1>, scalar_prefetch = 0 : i64, scratch_operands = 0 : i64, tpu.core_type = #tpu.core_type<tc>, window_params = [{transform_indices = @transform_0, window_bounds = array<i64: 1, 128, 128>}, {transform_indices = @transform_1, window_bounds = array<i64: 1, 128, 128>}, {transform_indices = @transform_2, window_bounds = array<i64: 1, 128, 128>}]} {
    %c0 = arith.constant 0 : index
    %c0_0 = arith.constant 0 : index
    %c0_1 = arith.constant 0 : index
    %0 = vector.load %arg2[%c0, %c0_0, %c0_1] : memref<1x128x128xbf16, #tpu.memory_space<vmem>>, vector<1x128x128xbf16>
    %1 = vector.shape_cast %0 : vector<1x128x128xbf16> to vector<128x128xbf16>
    %c0_2 = arith.constant 0 : index
    %c0_3 = arith.constant 0 : index
    %c0_4 = arith.constant 0 : index
    %2 = vector.load %arg3[%c0_2, %c0_3, %c0_4] : memref<1x128x128xbf16, #tpu.memory_space<vmem>>, vector<1x128x128xbf16>
    %3 = vector.shape_cast %2 : vector<1x128x128xbf16> to vector<128x128xbf16>
    %cst = arith.constant dense<0.000000e+00> : vector<128x128xf32>
    %4 = tpu.matmul %1, %3, %cst {dimension_numbers = #tpu.dot_dimension_numbers<[1], [0], [0], [1], [0, 0, 1, 1], [], []>} : vector<128x128xbf16>, vector<128x128xbf16>, vector<128x128xf32> -> vector<128x128xf32>
    %5 = arith.truncf %4 : vector<128x128xf32> to vector<128x128xbf16>
    %c0_5 = arith.constant 0 : index
    %c0_6 = arith.constant 0 : index
    %c0_7 = arith.constant 0 : index
    %6 = vector.load %arg4[%c0_5, %c0_6, %c0_7] : memref<1x128x128xbf16, #tpu.memory_space<vmem>>, vector<1x128x128xbf16>
    %7 = vector.shape_cast %6 : vector<1x128x128xbf16> to vector<128x128xbf16>
    %8 = vector.shape_cast %5 : vector<128x128xbf16> to vector<1x128x128xbf16>
    tpu.vector_store %arg4[%c0_5, %c0_6, %c0_7], %8 {strides = array<i32>} : memref<1x128x128xbf16, #tpu.memory_space<vmem>>, vector<1x128x128xbf16>,
    return
  }
  func.func @transform_0(%arg0: i32, %arg1: i32) -> (i32, i32, i32) {
    %c0_i32 = arith.constant 0 : i32
    %c0_i32_0 = arith.constant 0 : i32
    return %arg0, %arg1, %c0_i32 : i32, i32, i32
  }
  func.func @transform_1(%arg0: i32, %arg1: i32) -> (i32, i32, i32) {
    %c0_i32 = arith.constant 0 : i32
    %c0_i32_0 = arith.constant 0 : i32
    %c0_i32_1 = arith.constant 0 : i32
    return %arg0, %c0_i32, %c0_i32_0 : i32, i32, i32
  }
  func.func @transform_2(%arg0: i32, %arg1: i32) -> (i32, i32, i32) {
    %c0_i32 = arith.constant 0 : i32
    %c0_i32_0 = arith.constant 0 : i32
    return %arg0, %arg1, %c0_i32 : i32, i32, i32
  }
}

</mosaic_0001>

<bundles_post_ra>
// kernel: tpu_custom_call.1
= control target key start
LH: loop header
LB: loop body
LE: loop exit
PB: predicated region body
PF: predicated region fallthrough
CT: control target
= control target key end

     0   :  { %7 = vsyncpa [#allocation3], 0  ;;  %s1140_s0 = inlined_call_operand.hbm [shape: bf16[2,128,128], index: 0, kind: input, shape index: {}]   ;;  %s1141_s1 = inlined_call_operand.hbm [shape: bf16[2,128,128], index: 1, kind: input, shape index: {}]   ;;  %s1142_s2 = inlined_call_operand.hbm [shape: bf16[2,128,128], index: 2, kind: output, shape index: {}]  }
   0x1   :  { %9 = vsyncpa [#allocation3 + $0x1], 0 }
   0x2   :  { %10 = vsyncpa [#allocation6], 0 }
   0x3   :  { %12 = vsyncpa [#allocation6 + $0x1], 0 }
   0x4   :  { %13 = vsyncpa [#allocation4], 0 }
   0x5   :  { %15 = vsyncpa [#allocation4 + $0x1], 0  ;;  %s974_s9 = smov 0   ;;  %s976_s10 = smov 0  }
   0x6   :  { %s978_s11 = smov 0   ;;  %s980_s12 = smov 0  }
   0x7   :  { %s982_s13 = smov 0   ;;  %s984_s14 = smov 0  }
   0x8 LB: > { %s563_s15 = sadd.s32 4294967295, %s953_s14   ;;  %s564_s16 = sadd.s32 4294967294, %s953_s14   ;;  %s953_s14 = sphi %s984_s14, %s21_s14   ;;  %s949_s13 = sphi %s982_s13, %s1152_s13   ;;  %s945_s12 = sphi %s980_s12, %s1151_s12   ;;  %s941_s11 = sphi %s978_s11, %s1150_s11   ;;  %s937_s10 = sphi %s976_s10, %s1149_s10   ;;  %s933_s9 = sphi %s974_s9, %s1148_s9  }
   0x9   : > { %s33_s17 = sadd.s32 1, %s949_s13  ;;  %s42_s18 = sadd.s32 1, %s941_s11 }
   0xa   : > { %p35_p0 = scmp.ge.s32.totalorder %s33_s17, 2  ;;  %p49_p1 = scmp.ne.s32.totalorder %s941_s11, %s937_s10 }
   0xb   : > { %p50_p2 = scmp.eq.s32.totalorder %s953_s14, 0  ;;  %p55_p3 = scmp.ne.s32.totalorder %s937_s10, %s933_s9 }
   0xc   : > { %s1154_s17 = smov (%p35_p0, %s33_s17), 0  ;;  %p56_p5 = scmp.eq.s32.totalorder %s563_s15, 0 }
   0xd   : > { %p1015_p4 = por %p50_p2, %p49_p1  ;;  %s37_s20 = ssub.s32 %s949_s13, %s1154_s17 }
   0xe   : > { %p107_p6 = scmp.eq.s32.totalorder %s563_s15, 1  ;;  %p40_p7 = scmp.eq.s32.totalorder %s37_s20, 0 }
   0xf   : > { %p1021_p8 = por %p56_p5, %p55_p3  ;;  %p113_p10 = scmp.eq.s32.totalorder %s564_s16, 1 }
  0x10   : > { %p1025_p9 = por %p107_p6, %p49_p1  ;;  %p566_p12 = scmp.ge.s32.totalorder %s953_s14, 2 }
  0x11   : > { %s1030_s23 = scalar_select %p40_p7, %s941_s11, %s42_s18  }
  0x12   : > { %p1032_p11 = por %p113_p10, %p55_p3  ;;  %p753_p13 = scmp.lt.s32.totalorder %s953_s14, 2 }
  0x13   : > { %s1039_s25 = sand.u32 1, %s941_s11   ;;  %s646_s27 = sshll.u32 %s949_s13, 6 }
  0x14   : > { %s567_s26 = sshll.u32 %s1039_s25, 6  ;;  %s144_s30 = scalar_lea.hbm %s1140_s0, %s646_s27 }
  0x15   : > { %s137_s3 = scalar_lea.vmem [#allocation2], %s567_s26  ;;  %s145_s5 = sshll.u32 %s144_s30, 4  ;;  %s146_s5 = int_to_ptr.hbm [resolvable:$true] %s145_s5 }
  0x16   : > { %s147_s4 = sshll.u32 %s137_s3, 4  ;;  %p1048_p0 = pnand %p753_p13, %p1015_p4  ;;  %s148_s4 = int_to_ptr.vmem [resolvable:$true] %s147_s4 }
  0x17   : > { %p573_p1 = scmp.ge.s32.totalorder %s953_s14, 1  ;;  %s134_s7 = scalar_lea.sflag [#allocation3], %s1039_s25 }
  0x18   : > { %s955_s8 = smov 64   ;;  %s956_s15 = smov 4  }
  0x19   : > { %745 = dma.hbm_to_vmem [thread:$0]  (!%p1048_p0), %s146_s5, 1024, %s148_s4, %s134_s7, %s955_s8, %s955_s8, %s956_s15  }
  0x1a   : > { %p177_p2 = scmp.lt.s32.totalorder %s953_s14, 3  ;;  %s166_s20 = scalar_lea.hbm %s1141_s1, %s646_s27 }
  0x1b   : > { %s167_s28 = sshll.u32 %s166_s20, 4  ;;  %s161_s19 = scalar_lea.vmem [#allocation5], %s567_s26  ;;  %s168_s28 = int_to_ptr.hbm [resolvable:$true] %s167_s28 }
  0x1c   : > { %p178_p3 = pnand %p573_p1, %p177_p2  ;;  %s169_s29 = sshll.u32 %s161_s19, 4  ;;  %s170_s29 = int_to_ptr.vmem [resolvable:$true] %s169_s29 }
  0x1d   : > { %s158_s30 = scalar_lea.sflag [#allocation6], %s1039_s25  ;;  %s1064_s3 = sand.u32 (!%p178_p3), 1, %s937_s10  }
  0x1e   : > { %748 = dma.hbm_to_vmem [thread:$0]  (!%p1048_p0), %s168_s28, 1024, %s170_s29, %s158_s30, %s955_s8, %s955_s8, %s956_s15  }
  0x1f   : > { %181 = sbr.rel (%p178_p3) target bundleno = 235 (0xeb), region = 28  ;;  %s1067_s4 = sshll.u32 (!%p178_p3), %s1064_s3, 6 }
  0x20   : > { %s184_s27 = scalar_lea.sflag (!%p178_p3), [#allocation3], %s1064_s3  ;;  %s1071_s5 = scalar_lea.vmem (!%p178_p3), [#allocation2], %s1067_s4 }
  0x24   : > { %920 = dma.done.wait (%p1021_p8), %s184_s27, 1024  }
  0x25   : > { %922 = vsyncadd (%p1021_p8), %s184_s27, 4294966272  ;;  %s194_s25 = scalar_lea.sflag [#allocation6], %s1064_s3  ;;  %s1079_s26 = scalar_lea.vmem [#allocation5], %s1067_s4 }
  0x26   : > { %924 = dma.done.wait (%p1021_p8), %s194_s25, 1024  }
  0x27   : > { %926 = vsyncadd (%p1021_p8), %s194_s25, 4294966272  ;;  %v663_v0 = vld [vmem:[%s1079_s26 + $0x38] sm:$0xff]  ;;  %v662_v1 = vld [vmem:[%s1079_s26 + $0x30] sm:$0xff]  ;;  %s223_s21 = scalar_lea.vmem [#allocation7], %s1067_s4  ;;  %s664_s6 = sshll.u32 %s945_s12, 6 }
  0x28   : > { %354 = vmatpush.bf16.msra.mxu0 %v663_v0  ;;  %712 = vmatpush.bf16.msra.mxu1 %v663_v0  ;;  %v661_v2 = vld [vmem:[%s1079_s26 + $0x28] sm:$0xff]  ;;  %v660_v3 = vld [vmem:[%s1079_s26 + $0x20] sm:$0xff]  ;;  %v659_v4 = vld [vmem:[%s1079_s26 + $0x18] sm:$0xff]  ;;  %s449_s15 = scalar_lea.hbm %s1142_s2, %s664_s6  ;;  %s450_s16 = sshll.u32 %s223_s21, 4  ;;  %s451_s16 = int_to_ptr.vmem [resolvable:$true] %s450_s16 }
  0x29   : > { %713 = vmatpush.bf16.msra.mxu2 %v663_v0  ;;  %714 = vmatpush.bf16.msra.mxu3 %v663_v0  ;;  %v658_v5 = vld [vmem:[%s1079_s26 + $0x10] sm:$0xff]  ;;  %v657_v6 = vld [vmem:[%s1079_s26 + $0x8] sm:$0xff]  ;;  %v656_v7 = vld [vmem:[%s1079_s26] sm:$0xff]  ;;  %s452_s18 = sshll.u32 %s449_s15, 4  ;;  %s436_s12 = scalar_lea.sflag [#allocation4], %s1064_s3  ;;  %s453_s18 = int_to_ptr.hbm [resolvable:$true] %s452_s18 }
  0x2a   : > { %v648_v8 = vld [vmem:[%s1071_s5] sm:$0xff]  ;;  %v650_v9 = vld [vmem:[%s1071_s5 + $0x10] sm:$0xff]  ;;  %v649_v12 = vld [vmem:[%s1071_s5 + $0x8] sm:$0xff]  ;;  %s881_s20 = sshra.s32 %s453_s18, 4  ;;  %s887_s30 = scalar_lea.hbm %s1142_s2, 128  ;;  %s882_s20 = int_to_ptr.hbm [resolvable:$true] %s881_s20 }
  0x2b   : > { %v652_v10 = vld [vmem:[%s1071_s5 + $0x20] sm:$0xff]  ;;  %v654_v11 = vld [vmem:[%s1071_s5 + $0x30] sm:$0xff]  ;;  %v651_v13 = vld [vmem:[%s1071_s5 + $0x18] sm:$0xff]  ;;  %s883_s28 = scalar_lea.hbm %s882_s20, 64  ;;  %p888_p7 = scmp.lt.s32.totalorder %s882_s20, %s1142_s2 }
  0x2c   : > { %355 = vmatpush.bf16.msra.mxu0 %v662_v1  ;;  %715 = vmatpush.bf16.msra.mxu1 %v662_v1  ;;  %v653_v14 = vld [vmem:[%s1071_s5 + $0x28] sm:$0xff]  ;;  %v655_v15 = vld [vmem:[%s1071_s5 + $0x38] sm:$0xff]  ;;  %p884_p4 = scmp.ne.s32.totalorder %s882_s20, %s883_s28  ;;  %p889_p8 = scmp.lt.s32.totalorder %s887_s30, %s883_s28 }
  0x2d   : > { %716 = vmatpush.bf16.msra.mxu2 %v662_v1  ;;  %717 = vmatpush.bf16.msra.mxu3 %v662_v1 }
  0x2e   : > { %p885_p5 = pnand %p884_p4, %p1025_p9  ;;  %p890_p10 = por %p889_p8, %p888_p7 }
  0x30   : > { %356 = vmatpush.bf16.msra.mxu0 %v661_v2  ;;  %718 = vmatpush.bf16.msra.mxu1 %v661_v2  ;;  %p886_p6 = pneg %p885_p5 }
  0x31   : > { %719 = vmatpush.bf16.msra.mxu2 %v661_v2  ;;  %720 = vmatpush.bf16.msra.mxu3 %v661_v2 }
  0x32   : > { %p891_p13 = pnand %p890_p10, %p886_p6 }
  0x34   : > { %357 = vmatpush.bf16.msra.mxu0 %v660_v3  ;;  %721 = vmatpush.bf16.msra.mxu1 %v660_v3 }
  0x35   : > { %722 = vmatpush.bf16.msra.mxu2 %v660_v3  ;;  %723 = vmatpush.bf16.msra.mxu3 %v660_v3 }
  0x38   : > { %358 = vmatpush.bf16.msra.mxu0 %v659_v4  ;;  %724 = vmatpush.bf16.msra.mxu1 %v659_v4 }
  0x39   : > { %725 = vmatpush.bf16.msra.mxu2 %v659_v4  ;;  %726 = vmatpush.bf16.msra.mxu3 %v659_v4 }
  0x3c   : > { %359 = vmatpush.bf16.msra.mxu0 %v658_v5  ;;  %727 = vmatpush.bf16.msra.mxu1 %v658_v5 }
  0x3d   : > { %728 = vmatpush.bf16.msra.mxu2 %v658_v5  ;;  %729 = vmatpush.bf16.msra.mxu3 %v658_v5 }
  0x40   : > { %360 = vmatpush.bf16.msra.mxu0 %v657_v6  ;;  %730 = vmatpush.bf16.msra.mxu1 %v657_v6 }
  0x41   : > { %731 = vmatpush.bf16.msra.mxu2 %v657_v6  ;;  %732 = vmatpush.bf16.msra.mxu3 %v657_v6 }
  0x44   : > { %361 = vmatpush.bf16.msra.mxu0 %v656_v7  ;;  %733 = vmatpush.bf16.msra.mxu1 %v656_v7 }
  0x45   : > { %734 = vmatpush.bf16.msra.mxu2 %v656_v7  ;;  %735 = vmatpush.bf16.msra.mxu3 %v656_v7 }
  0x47   : > { %362 = vmatmul.bf16.vlgmr.msra.gmra.mxu0 %v648_v8  ;;  %372 = vmatmul.bf16.vlgmr.msra.gmra.mxu1 %v650_v9 }
  0x48   : > { %382 = vmatmul.bf16.vlgmr.msra.gmra.mxu2 %v652_v10  ;;  %392 = vmatmul.bf16.vlgmr.msra.gmra.mxu3 %v654_v11 }
  0x57   : > { %367 = vmatmul.bf16.gmra.mxu0 %v649_v12  ;;  %377 = vmatmul.bf16.gmra.mxu1 %v651_v13 }
  0x58   : > { %387 = vmatmul.bf16.gmra.mxu2 %v653_v14  ;;  %397 = vmatmul.bf16.gmra.mxu3 %v655_v15 }
  0xc4   : > { %v363_v16 = vpop.f32.mrf.mxu0  ;;  %v373_v17 = vpop.f32.mrf.mxu1 }
  0xcb   : > { %v383_v18 = vpop.f32.mrf.mxu2  ;;  %v393_v19 = vpop.f32.mrf.mxu3 }
  0xcc   : > { %v365_v20 = vpop.f32.mrf.mxu0  ;;  %v375_v21 = vpop.f32.mrf.mxu1 }
  0xcd   : > { %v668_v22 = vpack.c.bf16 %v365_v20, %v363_v16  ;;  %v678_v23 = vpack.c.bf16 %v375_v21, %v373_v17 }
  0xcf   : > { %669 = vst [vmem:[%s223_s21] sm:$0xff] %v668_v22  }
  0xd0   : > { %706 = vst [vmem:[%s223_s21 + $0x10] sm:$0xff] %v678_v23  }
  0xd3   : > { %v385_v24 = vpop.f32.mrf.mxu2  ;;  %v395_v25 = vpop.f32.mrf.mxu3 }
  0xd4   : > { %v688_v26 = vpack.c.bf16 %v385_v24, %v383_v18  ;;  %v698_v27 = vpack.c.bf16 %v395_v25, %v393_v19  ;;  %v368_v28 = vpop.f32.mrf.mxu0  ;;  %v378_v29 = vpop.f32.mrf.mxu1 }
  0xd6   : > { %708 = vst [vmem:[%s223_s21 + $0x20] sm:$0xff] %v688_v26  }
  0xd7   : > { %710 = vst [vmem:[%s223_s21 + $0x30] sm:$0xff] %v698_v27  }
  0xdb   : > { %v388_v30 = vpop.f32.mrf.mxu2  ;;  %v398_v31 = vpop.f32.mrf.mxu3 }
  0xdc   : > { %v370_v32 = vpop.f32.mrf.mxu0  ;;  %v380_v33 = vpop.f32.mrf.mxu1 }
  0xdd   : > { %v673_v34 = vpack.c.bf16 %v370_v32, %v368_v28  ;;  %v683_v35 = vpack.c.bf16 %v380_v33, %v378_v29 }
  0xdf   : > { %705 = vst [vmem:[%s223_s21 + $0x8] sm:$0xff] %v673_v34  }
  0xe0   : > { %707 = vst [vmem:[%s223_s21 + $0x18] sm:$0xff] %v683_v35  }
  0xe3   : > { %v390_v36 = vpop.f32.mrf.mxu2  ;;  %v400_v37 = vpop.f32.mrf.mxu3 }
  0xe4   : > { %v693_v38 = vpack.c.bf16 %v390_v36, %v388_v30  ;;  %v703_v39 = vpack.c.bf16 %v400_v37, %v398_v31 }
  0xe6   : > { %709 = vst [vmem:[%s223_s21 + $0x28] sm:$0xff] %v693_v38  }
  0xe7   : > { %711 = vst [vmem:[%s223_s21 + $0x38] sm:$0xff] %v703_v39  }
  0xe8   : > { %894 = shalt.err (!%p891_p13)
}
  0xe9   : > { %s957_s3 = smov 64   ;;  %s958_s5 = smov 4  }
  0xea   : > { %740 = dma.vmem_to_hbm [thread:$0]  (%p1025_p9), %s451_s16, 1024, %s453_s18, %s436_s12, %s957_s3, %s957_s3, %s958_s5  }
  0xeb PF: > { %s467_s25 = sand.u32 1, %s933_s9   ;;  %p750_p0 = pnand %p566_p12, %p1032_p11 }
  0xec   : > { %s468_s26 = scalar_lea.sflag [#allocation4], %s467_s25 }
  0xed   : > { %p751_p1 = pneg %p750_p0 }
  0xef   : > { %928 = dma.done.wait (%p751_p1), %s468_s26, 1024  }
  0xf0   : > { %930 = vsyncadd (%p751_p1), %s468_s26, 4294966272  ;;  %s21_s14 = sadd.s32 1, %s953_s14   ;;  %s1148_s9 = smov %s937_s10 }
  0xf1   : > { %p18_p2 = scmp.ge.s32.totalorder %s21_s14, 4   ;;  %s1149_s10 = smov %s941_s11 }
  0xf2   : > { %s1150_s11 = smov %s1030_s23  ;;  %s1151_s12 = smov %s949_s13 }
  0xf3   : > { %s1152_s13 = smov %s1154_s17  ;;  %20 = sbr.rel (!%p18_p2) target bundleno = 8 (0x8), region = 86 }
  0xf8   :  { %474 = vsyncpa [#allocation3], 1 }
  0xf9   :  { %476 = vsyncpa [#allocation3 + $0x1], 1 }
  0xfa   :  { %477 = vsyncpa [#allocation6], 1 }
  0xfb   :  { %479 = vsyncpa [#allocation6 + $0x1], 1 }
  0xfc   :  { %480 = vsyncpa [#allocation4], 1 }
  0xfd   :  { %482 = vsyncpa [#allocation4 + $0x1], 1 }

</bundles_post_ra>
